<compile_context>
chip_gen: v7x
topology: tpu7x:2x2x1
jax: 0.10.0
libtpu: 0.0.40
codegen_flags: <defaults>
</compile_context>

<pallas_src>
import functools

import jax
import jax.numpy as jnp
from jax.experimental import pallas as pl
from jax.experimental.pallas import tpu as pltpu


def lr_kernel(params_ref, x_ref, o_ref):
    # params_ref: SMEM f32[3] = [w0, w1, b]
    # x_ref:      VMEM f32[2, TILE_ROWS, 128]  (features, batch-rows, lanes)
    # o_ref:      VMEM f32[TILE_ROWS, 128]     (dense (8,128)-tiled output)
    w0 = params_ref[0]
    w1 = params_ref[1]
    b = params_ref[2]
    x0 = x_ref[0]                      # (TILE_ROWS, 128)
    x1 = x_ref[1]                      # (TILE_ROWS, 128)
    z = x0 * w0 + x1 * w1 + b          # VPU only — no MXU, no transpose
    # sigmoid(z) = 0.5 * (tanh(0.5*z) + 1): single EUP op, exact f32.
    o_ref[...] = 0.5 * (jnp.tanh(0.5 * z) + 1.0)


@functools.partial(jax.jit, static_argnames=("tile_rows",))
def lr_forward(x, w, b, *, tile_rows=4096):
    """sigmoid(x @ W^T + b) for x:(N,2), w:(1,2) (PyTorch layout), b:(1,) -> (N,1)."""
    N, F = x.shape
    OUT = w.shape[0]
    assert F == 2 and OUT == 1

    # Pad the batch only to 1024-element (8 sublanes x 128 lanes) granularity.
    n_pad = pl.cdiv(N, 1024) * 1024
    n_rows = n_pad // 128                                  # multiple of 8
    tile = max(8, (min(tile_rows, n_rows) // 8) * 8)       # multiple of 8 rows

    # Single fused relayout: cast + transpose + pad + reshape -> (F, n_rows, 128).
    x_t = jnp.pad(jnp.transpose(x.astype(jnp.float32)), ((0, 0), (0, n_pad - N)))
    x_3d = x_t.reshape(F, n_rows, 128)

    # All three parameters as one flat SMEM array: [w0, w1, b].
    params = jnp.concatenate(
        [w.reshape(-1), b.reshape(-1)]).astype(jnp.float32)  # (3,)

    out = pl.pallas_call(
        lr_kernel,
        out_shape=jax.ShapeDtypeStruct((n_rows, 128), jnp.float32),
        grid=(pl.cdiv(n_rows, tile),),
        in_specs=[
            pl.BlockSpec(memory_space=pltpu.MemorySpace.SMEM),     # params (whole, SMEM)
            pl.BlockSpec((F, tile, 128), lambda i: (0, i, 0)),     # x stream, double-buffered
        ],
        out_specs=pl.BlockSpec((tile, 128), lambda i: (i, 0)),     # dense output tiles
        compiler_params=pltpu.CompilerParams(
            dimension_semantics=("parallel",)),                    # v7x: shard tiles over 2 TCs
        cost_estimate=pl.CostEstimate(
            flops=7 * n_pad,
            transcendentals=n_pad,
            bytes_accessed=(F + 1) * n_pad * 4 + 3 * 4),
    )(params, x_3d)

    # Flat (n_rows, 128) row-major order == padded batch order; drop the tail.
    return out.reshape(-1)[:N].reshape(N, OUT)


if __name__ == "__main__":
    key = jax.random.PRNGKey(0)
    kx, kw, kb = jax.random.split(key, 3)

    N, F, OUT = 8, 2, 1  # LR module: batch of 8, 2 features -> 1 logit
    x = jax.random.normal(kx, (N, F), dtype=jnp.float32)
    # nn.Linear-style uniform(-1/sqrt(F), 1/sqrt(F)) init.
    bound = 1.0 / jnp.sqrt(jnp.float32(F))
    w = jax.random.uniform(kw, (OUT, F), dtype=jnp.float32, minval=-bound, maxval=bound)
    b = jax.random.uniform(kb, (OUT,), dtype=jnp.float32, minval=-bound, maxval=bound)

    out = jax.block_until_ready(lr_forward(x, w, b))

    # Reference in plain JAX.
    ref = jax.nn.sigmoid(x @ w.T + b[None, :])
    assert out.shape == (N, OUT)
    # Exact f32 math (tanh-based sigmoid, no approx reciprocal) -> tight tolerance.
    assert jnp.allclose(out, ref, atol=1e-5, rtol=1e-5), "mismatch vs reference"

    print("KERNEL_OK")
</pallas_src>

<mosaic_0001>
module attributes {stable_mosaic.version = 11 : i64} {
  func.func @lr_kernel(%arg0: i32, %arg1: memref<3xf32, #tpu.memory_space<smem>>, %arg2: memref<2x8x128xf32, #tpu.memory_space<vmem>>, %arg3: memref<8x128xf32, #tpu.memory_space<vmem>>) attributes {dimension_semantics = [#tpu.dimension_semantics<parallel>], iteration_bounds = array<i64: 1>, scalar_prefetch = 0 : i64, scratch_operands = 0 : i64, tpu.core_type = #tpu.core_type<tc>, window_params = [{transform_indices = @transform_0, window_bounds = array<i64: 3>}, {transform_indices = @transform_1, window_bounds = array<i64: 2, 8, 128>}, {transform_indices = @transform_2, window_bounds = array<i64: 8, 128>}]} {
    %c0 = arith.constant 0 : index
    %0 = memref.load %arg1[%c0] : memref<3xf32, #tpu.memory_space<smem>>
    %c1 = arith.constant 1 : index
    %1 = memref.load %arg1[%c1] : memref<3xf32, #tpu.memory_space<smem>>
    %c2 = arith.constant 2 : index
    %2 = memref.load %arg1[%c2] : memref<3xf32, #tpu.memory_space<smem>>
    %c0_0 = arith.constant 0 : index
    %c0_1 = arith.constant 0 : index
    %c0_2 = arith.constant 0 : index
    %3 = vector.load %arg2[%c0_0, %c0_1, %c0_2] : memref<2x8x128xf32, #tpu.memory_space<vmem>>, vector<1x8x128xf32>
    %4 = vector.shape_cast %3 : vector<1x8x128xf32> to vector<8x128xf32>
    %c1_3 = arith.constant 1 : index
    %c0_4 = arith.constant 0 : index
    %c0_5 = arith.constant 0 : index
    %5 = vector.load %arg2[%c1_3, %c0_4, %c0_5] : memref<2x8x128xf32, #tpu.memory_space<vmem>>, vector<1x8x128xf32>
    %6 = vector.shape_cast %5 : vector<1x8x128xf32> to vector<8x128xf32>
    %7 = vector.broadcast %0 : f32 to vector<8x128xf32>
    %8 = arith.mulf %4, %7 : vector<8x128xf32>
    %9 = vector.broadcast %1 : f32 to vector<8x128xf32>
    %10 = arith.mulf %6, %9 : vector<8x128xf32>
    %11 = arith.addf %8, %10 : vector<8x128xf32>
    %12 = vector.broadcast %2 : f32 to vector<8x128xf32>
    %13 = arith.addf %11, %12 : vector<8x128xf32>
    %cst = arith.constant 5.000000e-01 : f32
    %14 = vector.broadcast %cst : f32 to vector<8x128xf32>
    %15 = arith.mulf %14, %13 : vector<8x128xf32>
    %16 = math.tanh %15 : vector<8x128xf32>
    %cst_6 = arith.constant 1.000000e+00 : f32
    %17 = vector.broadcast %cst_6 : f32 to vector<8x128xf32>
    %18 = arith.addf %16, %17 : vector<8x128xf32>
    %cst_7 = arith.constant 5.000000e-01 : f32
    %19 = vector.broadcast %cst_7 : f32 to vector<8x128xf32>
    %20 = arith.mulf %19, %18 : vector<8x128xf32>
    %c0_8 = arith.constant 0 : index
    %c0_9 = arith.constant 0 : index
    %21 = vector.load %arg3[%c0_8, %c0_9] : memref<8x128xf32, #tpu.memory_space<vmem>>, vector<8x128xf32>
    tpu.vector_store %arg3[%c0_8, %c0_9], %20 {strides = array<i32>} : memref<8x128xf32, #tpu.memory_space<vmem>>, vector<8x128xf32>,
    return
  }
  func.func @transform_0(%arg0: i32) -> i32 {
    %c0_i32 = arith.constant 0 : i32
    %c0_i32_0 = arith.constant 0 : i32
    return %c0_i32 : i32
  }
  func.func @transform_1(%arg0: i32) -> (i32, i32, i32) {
    %c0_i32 = arith.constant 0 : i32
    %c0_i32_0 = arith.constant 0 : i32
    %c0_i32_1 = arith.constant 0 : i32
    return %c0_i32, %arg0, %c0_i32_0 : i32, i32, i32
  }
  func.func @transform_2(%arg0: i32) -> (i32, i32) {
    %c0_i32 = arith.constant 0 : i32
    %c0_i32_0 = arith.constant 0 : i32
    return %arg0, %c0_i32 : i32, i32
  }
}

</mosaic_0001>

<bundles_post_ra>
// kernel: lr_forward.1
= control target key start
LH: loop header
LB: loop body
LE: loop exit
PB: predicated region body
PF: predicated region fallthrough
CT: control target
= control target key end

     0   :  { %7 = vsyncpa [#allocation3], 0  ;;  %s95_s0 = inlined_call_operand.vmem [shape: f32[3], index: 0, kind: input, shape index: {}]   ;;  %s96_s1 = inlined_call_operand.vmem [shape: f32[2,8,128], index: 1, kind: input, shape index: {}]   ;;  %s97_s2 = inlined_call_operand.vmem [shape: f32[8,128], index: 2, kind: output, shape index: {}]  }
   0x1   :  { %s14_s11 = sshll.u32 %s95_s0, 4  ;;  %s15_s11 = int_to_ptr.vmem [resolvable:$true] %s14_s11 }
   0x2   :  { %s53_s12 = scalar_lea.vmem %s15_s11, 16  ;;  %p58_p1 = scmp.lt.s32.totalorder %s15_s11, %s15_s11 }
   0x3   :  { %p54_p0 = scmp.ne.s32.totalorder %s15_s11, %s53_s12  ;;  %p59_p2 = scmp.lt.s32.totalorder %s53_s12, %s53_s12 }
   0x5   :  { %p60_p3 = por %p59_p2, %p58_p1 }
   0x7   :  { %p61_p4 = pnand %p60_p3, %p54_p0 }
   0x9   :  { %64 = shalt.err (!%p61_p4)
}
   0xa   :  { %s67_s13 = smov [#allocation2]  }
   0xb   :  { %17 = dma.vmem_to_smem %s15_s11, 16, %s67_s13, [#allocation3]  }
   0xc   :  { %65 = dma.done.wait [#allocation3], 16  }
   0xd   :  { %66 = vsyncadd [#allocation3], 4294967280 }
   0xe   :  { %23 = sfence }
   0xf   :  { %s24_s14 = sld [smem:[#allocation2]]  ;;  %s47_s15 = sld [smem:[#allocation2 + $0x1]]  ;;  %v27_v0 = vld [vmem:[%s96_s1] sm:$0xff]  ;;  %v49_v1 = vld [vmem:[%s96_s1 + $0x8] sm:$0xff] }
  0x10   :  { %s48_s16 = sld [smem:[#allocation2 + $0x2]] }
  0x15   :  { %v30_v2 = vstv %s24_s14  ;;  %v32_v3 = vstv %s47_s15 }
  0x16   :  { %v31_v4 = vmul.f32 %v30_v2, %v27_v0  ;;  %v33_v5 = vmul.f32 %v49_v1, %v32_v3  ;;  %v35_v6 = vstv %s48_s16 }
  0x18   :  { %v34_v7 = vadd.f32 %v33_v5, %v31_v4 }
  0x1a   :  { %v36_v8 = vadd.f32 %v35_v6, %v34_v7 }
  0x1c   :  { %v37_v9 = vmul.f32 0.5, %v36_v8 }
  0x1e   :  { %51 = vtanh.f32 %v37_v9 }
  0x28   :  { %v52_v10 = vpop.eup %51 }
  0x29   :  { %v39_v11 = vadd.f32 1.0, %v52_v10 }
  0x2b   :  { %v40_v12 = vmul.f32 0.5, %v39_v11 }
  0x2d   :  { %41 = vst [vmem:[%s97_s2] sm:$0xff] %v40_v12 }
  0x2e   :  { %46 = vsyncpa [#allocation3], 1 }

</bundles_post_ra>
